<compile_context>
chip_gen: v7x
topology: tpu7x:2x2x1
jax: 0.10.0
libtpu: 0.0.40
codegen_flags: <defaults>
</compile_context>

<pallas_src>
import jax
import jax.numpy as jnp
from jax.experimental import pallas as pl
from jax.experimental.pallas import tpu as pltpu

_EPS = 1e-5  # nn.BatchNorm2d default eps


# ---------------------------------------------------------------------------
# small helpers traced inside the Pallas kernel bodies
# ---------------------------------------------------------------------------
def _bn_relu(x, aff):
    """x: (R, T) f32, aff: (R, 2) = [scale, shift] columns -> relu(x*s + b)."""
    return jnp.maximum(x * aff[:, 0:1] + aff[:, 1:2], 0.0)


def _affine_matvec(wb, h):
    """Block-diagonal 1x1 conv as VPU broadcast-FMAs.

    wb: (Ro, Ri + 1) block-diag weights with the bias in the last column.
    h:  (Ri, T).  Ri is tiny (N*C <= 16 here), so the MXU is not worth it.
    TODO(synk): for large channel counts switch this to an MXU jnp.dot.
    """
    ri_n = h.shape[0]
    acc = wb[:, ri_n:ri_n + 1]                       # bias column, broadcasts
    for ri in range(ri_n):
        acc = acc + wb[:, ri:ri + 1] * h[ri:ri + 1, :]
    return acc


def _row_stats(v):
    """Per-row [sum, sum-of-squares] over the lane axis -> (R, 2)."""
    s = jnp.sum(v, axis=1, keepdims=True)
    ss = jnp.sum(v * v, axis=1, keepdims=True)
    return jnp.concatenate([s, ss], axis=1)


# ---------------------------------------------------------------------------
# kernels
# ---------------------------------------------------------------------------
def _stats_kernel(x_ref, st_ref):
    """Partial (per lane tile) BN statistics of the input."""
    st_ref[0] = _row_stats(x_ref[...].astype(jnp.float32))


def _bn_conv_kernel(x_ref, aff_ref, wb_ref, ok_ref, y_ref, st_ref):
    """BN(affine) + ReLU + 1x1 conv on one lane tile, plus partial stats."""
    x = x_ref[...].astype(jnp.float32)
    h = _bn_relu(x, aff_ref[...])
    y = _affine_matvec(wb_ref[...], h) * ok_ref[...]    # zero the padded lanes
    y_ref[...] = y.astype(y_ref.dtype)
    st_ref[0] = _row_stats(y)


def _make_dw_kernel(w_img):
    """Depthwise 3x3 (pad=1) over flattened-HW rows via XLU lane rolls."""
    def kernel(h_ref, wb_ref, m_ref, z_ref, st_ref):
        h = h_ref[...].astype(jnp.float32)              # (rb, HWp)
        wb = wb_ref[...]                                # (rb, 10): 9 taps+bias
        m = m_ref[...]                                  # (9, HWp) tap masks
        hwp = h.shape[1]
        acc = h * (m[4:5, :] * wb[:, 4:5])              # center tap
        t = 0
        for dh in (-1, 0, 1):
            for dw in (-1, 0, 1):
                if dh == 0 and dw == 0:
                    t += 1
                    continue
                off = dh * w_img + dw
                shifted = pltpu.roll(h, (-off) % hwp, 1)   # out[p] = h[p+off]
                acc = acc + shifted * (m[t:t + 1, :] * wb[:, t:t + 1])
                t += 1
        z = (acc + wb[:, 9:10]) * m[4:5, :]             # + bias, zero padding
        z_ref[...] = z.astype(z_ref.dtype)
        st_ref[...] = _row_stats(z)
    return kernel


def _make_final_kernel(use_skip):
    """BN3 + ReLU + 1x1 conv + residual (identity or 1x1 skip conv)."""
    def kernel(z_ref, x_ref, aff_ref, wb_ref, *rest):
        if use_skip:
            wbsk_ref, o_ref = rest
        else:
            (o_ref,) = rest
        z = z_ref[...].astype(jnp.float32)
        y = _affine_matvec(wb_ref[...], _bn_relu(z, aff_ref[...]))
        x = x_ref[...].astype(jnp.float32)
        res = _affine_matvec(wbsk_ref[...], x) if use_skip else x
        o_ref[...] = (y + res).astype(o_ref.dtype)
    return kernel


# ---------------------------------------------------------------------------
# wrapper-side helpers
# ---------------------------------------------------------------------------
def _vmem_limit_bytes():
    """Generation-aware scoped-VMEM limit (128 MiB phys v5e/v6e, 64 MiB v7x)."""
    try:
        cap = int(pltpu.get_tpu_info().vmem_capacity_bytes)
    except Exception:                                   # conservative fallback
        cap = 64 * 1024 * 1024
    return int(min(cap * 3 // 4, 100 * 1024 * 1024))


def _pick_lane_tile(hwp, rows, itemsize, budget_bytes):
    """Largest multiple-of-128 divisor of hwp whose double-buffered tiles fit."""
    per_lane = max(1, rows * itemsize * 2)
    max_lanes = max(128, budget_bytes // per_lane)
    best = 128
    for t in range(128, hwp + 1, 128):
        if hwp % t == 0 and t <= max_lanes:
            best = t
    return best


def _bn_affine(stats, gamma, beta, n, c, count):
    """Per-row [sum, sumsq] -> per-channel BN scale/shift, tiled N times."""
    s = stats[:, 0].reshape(n, c).sum(axis=0)
    ss = stats[:, 1].reshape(n, c).sum(axis=0)
    mu = s / count
    var = jnp.maximum(ss / count - mu * mu, 0.0)        # clamp (review fix)
    scale = gamma.astype(jnp.float32) * jax.lax.rsqrt(var + _EPS)
    shift = beta.astype(jnp.float32) - mu * scale
    return jnp.tile(jnp.stack([scale, shift], axis=1), (n, 1))     # (n*c, 2)


# ---------------------------------------------------------------------------
# forward
# ---------------------------------------------------------------------------
def residual_forward(x_nchw, params, ins, outs, act_dtype=jnp.float32):
    use_skip = ins != outs
    hdim = outs // 2
    N, C, H, W = x_nchw.shape
    assert C == ins
    HW = H * W
    HWp = ((HW + 127) // 128) * 128                     # lane-dense stores
    r_in, r_h, r_out = N * ins, N * hdim, N * outs
    count = float(N * HW)
    f32 = jnp.float32
    isz = jnp.dtype(act_dtype).itemsize

    (g1, be1, w1, b1, g2, be2, wpw, wdw, bdw, g3, be3, w2, b2, *rest) = params

    # Fold batch into the sublane (row) axis; zero-pad HW up to HWp.
    x2 = x_nchw.reshape(r_in, HW).astype(act_dtype)
    if HWp != HW:
        x2 = jnp.pad(x2, ((0, 0), (0, HWp - HW)))

    # Lane-validity + depthwise tap masks, precomputed once (review: hoist).
    pos = jnp.arange(HWp, dtype=jnp.int32)
    hh, ww = pos // W, pos % W
    ok = (pos < HW).astype(f32)[None, :]                             # (1, HWp)
    masks = jnp.stack(
        [((hh + dh >= 0) & (hh + dh < H) & (ww + dw >= 0) & (ww + dw < W)
          ).astype(f32)
         for dh in (-1, 0, 1) for dw in (-1, 0, 1)], axis=0)         # (9, HWp)

    def pack_wb(w, b):
        """(cin, cout)[, (cout,)] -> block-diag (N*cout, N*cin+1) weight|bias."""
        wbd = jnp.kron(jnp.eye(N, dtype=f32), w.astype(f32).T)
        bcol = (jnp.tile(b.astype(f32), N)[:, None] if b is not None
                else jnp.zeros((wbd.shape[0], 1), f32))
        return jnp.concatenate([wbd, bcol], axis=1)

    wb1 = pack_wb(w1, b1)                          # (r_h,   r_in + 1)
    wbpw = pack_wb(wpw, None)                      # (r_h,   r_h  + 1)
    wb2 = pack_wb(w2, b2)                          # (r_out, r_h  + 1)
    wbsk = pack_wb(*rest) if use_skip else None    # (r_out, r_in + 1)
    dwwb = jnp.concatenate(                        # (r_h, 10): 9 taps + bias
        [jnp.tile(wdw.astype(f32).reshape(9, hdim).T, (N, 1)),
         jnp.tile(bdw.astype(f32), N)[:, None]], axis=1)

    vlimit = _vmem_limit_bytes()
    T = _pick_lane_tile(HWp, r_in + 2 * r_h + r_out, isz, vlimit // 4)
    G = HWp // T
    cparams = pltpu.CompilerParams(dimension_semantics=("parallel",),
                                   vmem_limit_bytes=vlimit)

    def hwspec(rows):            # lane-tiled activation block
        return pl.BlockSpec((rows, T), lambda i: (0, i))

    def full2(shape):            # small resident parameter block
        return pl.BlockSpec(shape, lambda i: (0, 0))

    def stspec(rows):            # per-tile partial-stats block
        return pl.BlockSpec((1, rows, 2), lambda i: (i, 0, 0))

    def ce(flops, nbytes):
        return pl.CostEstimate(flops=int(flops), transcendentals=0,
                               bytes_accessed=int(nbytes))

    # ---- pass 0: BN1 batch statistics of x --------------------------------
    st_x = pl.pallas_call(
        _stats_kernel, grid=(G,),
        in_specs=[hwspec(r_in)],
        out_specs=stspec(r_in),
        out_shape=jax.ShapeDtypeStruct((G, r_in, 2), f32),
        compiler_params=cparams,
        cost_estimate=ce(3 * r_in * HWp, r_in * HWp * isz),
    )(x2)
    aff1 = _bn_affine(st_x.sum(axis=0), g1, be1, N, ins, count)

    # ---- pass 1: BN1 + ReLU + Conv2d(ins, hdim, 1) -> y1, stats(y1) -------
    y1, st_y1 = pl.pallas_call(
        _bn_conv_kernel, grid=(G,),
        in_specs=[hwspec(r_in), full2((r_in, 2)), full2((r_h, r_in + 1)),
                  hwspec(1)],
        out_specs=(hwspec(r_h), stspec(r_h)),
        out_shape=(jax.ShapeDtypeStruct((r_h, HWp), act_dtype),
                   jax.ShapeDtypeStruct((G, r_h, 2), f32)),
        compiler_params=cparams,
        cost_estimate=ce((3 * r_in + 2 * r_h * (r_in + 1) + 4 * r_h) * HWp,
                         (r_in + r_h) * HWp * isz),
    )(x2, aff1, wb1, ok)
    aff2 = _bn_affine(st_y1.sum(axis=0), g2, be2, N, hdim, count)

    # ---- pass 2: BN2 + ReLU + BSConvU pointwise -> h1 (stats unused) ------
    h1, _ = pl.pallas_call(
        _bn_conv_kernel, grid=(G,),
        in_specs=[hwspec(r_h), full2((r_h, 2)), full2((r_h, r_h + 1)),
                  hwspec(1)],
        out_specs=(hwspec(r_h), stspec(r_h)),
        out_shape=(jax.ShapeDtypeStruct((r_h, HWp), act_dtype),
                   jax.ShapeDtypeStruct((G, r_h, 2), f32)),
        compiler_params=cparams,
        cost_estimate=ce((3 * r_h + 2 * r_h * (r_h + 1) + 4 * r_h) * HWp,
                         2 * r_h * HWp * isz),
    )(y1, aff2, wbpw, ok)

    # ---- pass 3: BSConvU depthwise 3x3 + bias -> z, stats(z) --------------
    # Rows (= batch*channel images) are independent, so grid over row blocks
    # with the full padded HW on lanes and XLU lane rolls for the 8 taps.
    # TODO(synk): for W >= 128 use 2-D (H, W) tiles with a 1-row halo so the
    # dh=+-1 taps become sublane shifts (2 lane rolls instead of 8 per tile).
    rb = 8 if (r_h % 8 == 0) else r_h
    z, st_z = pl.pallas_call(
        _make_dw_kernel(W), grid=(r_h // rb,),
        in_specs=[pl.BlockSpec((rb, HWp), lambda r: (r, 0)),
                  pl.BlockSpec((rb, 10), lambda r: (r, 0)),
                  pl.BlockSpec((9, HWp), lambda r: (0, 0))],
        out_specs=(pl.BlockSpec((rb, HWp), lambda r: (r, 0)),
                   pl.BlockSpec((rb, 2), lambda r: (r, 0))),
        out_shape=(jax.ShapeDtypeStruct((r_h, HWp), act_dtype),
                   jax.ShapeDtypeStruct((r_h, 2), f32)),
        compiler_params=cparams,
        cost_estimate=ce(31 * r_h * HWp, 2 * r_h * HWp * isz),
    )(h1, dwwb, masks)
    aff3 = _bn_affine(st_z, g3, be3, N, hdim, count)

    # ---- pass 4: BN3 + ReLU + Conv2d(hdim, outs, 1) + skip -----------------
    fin_specs = [hwspec(r_h), hwspec(r_in), full2((r_h, 2)),
                 full2((r_out, r_h + 1))]
    fin_inputs = [z, x2, aff3, wb2]
    if use_skip:
        fin_specs.append(full2((r_out, r_in + 1)))
        fin_inputs.append(wbsk)
    out = pl.pallas_call(
        _make_final_kernel(use_skip), grid=(G,),
        in_specs=fin_specs,
        out_specs=hwspec(r_out),
        out_shape=jax.ShapeDtypeStruct((r_out, HWp), f32),
        compiler_params=cparams,
        cost_estimate=ce((3 * r_h + 2 * r_out * (r_h + r_in + 2)) * HWp,
                         (r_h + r_in) * HWp * isz + r_out * HWp * 4),
    )(*fin_inputs)

    return out[:, :HW].reshape(N, outs, H, W)


# ---------------------------------------------------------------------------
# synthetic params + pure-JAX reference (correctness check only)
# ---------------------------------------------------------------------------
def init_params(key, ins, outs):
    """Deterministic synthetic parameters (no checkpoint loading)."""
    hdim = outs // 2
    ks = jax.random.split(key, 16)

    def nrm(k, shape, s):
        return jax.random.normal(k, shape, jnp.float32) * s

    params = [
        jax.random.uniform(ks[0], (ins,), jnp.float32, 0.5, 1.5),    # BN1 gamma
        nrm(ks[1], (ins,), 0.1),                                      # BN1 beta
        nrm(ks[2], (ins, hdim), 0.3),                                 # conv1 W
        nrm(ks[3], (hdim,), 0.05),                                    # conv1 b
        jax.random.uniform(ks[4], (hdim,), jnp.float32, 0.5, 1.5),    # BN2 gamma
        nrm(ks[5], (hdim,), 0.1),                                     # BN2 beta
        nrm(ks[6], (hdim, hdim), 0.3),                                # BSConvU pw W
        nrm(ks[7], (3, 3, hdim), 0.3),                                # BSConvU dw W
        nrm(ks[8], (hdim,), 0.05),                                    # BSConvU dw b
        jax.random.uniform(ks[9], (hdim,), jnp.float32, 0.5, 1.5),    # BN3 gamma
        nrm(ks[10], (hdim,), 0.1),                                    # BN3 beta
        nrm(ks[11], (hdim, outs), 0.3),                               # conv2 W
        nrm(ks[12], (outs,), 0.05),                                   # conv2 b
    ]
    if ins != outs:
        params += [nrm(ks[13], (ins, outs), 0.3),                     # skip W
                   nrm(ks[14], (outs,), 0.05)]                        # skip b
    return params


def reference_forward(x_nchw, params, ins, outs):
    """Pure-JAX reference (XLA conv/matmul) used only to check the kernels."""
    hdim = outs // 2
    x = jnp.transpose(x_nchw, (0, 2, 3, 1)).astype(jnp.float32)
    (g1, be1, w1, b1, g2, be2, wpw, wdw, bdw, g3, be3, w2, b2, *rest) = params

    def bn_relu(v, g, b):
        mu = v.mean(axis=(0, 1, 2), keepdims=True)
        var = ((v - mu) ** 2).mean(axis=(0, 1, 2), keepdims=True)
        return jnp.maximum((v - mu) * jax.lax.rsqrt(var + _EPS) * g + b, 0.0)

    y = bn_relu(x, g1, be1)
    y = jnp.einsum("nhwc,cd->nhwd", y, w1) + b1
    y = bn_relu(y, g2, be2)
    y = jnp.einsum("nhwc,cd->nhwd", y, wpw)
    y = jax.lax.conv_general_dilated(
        y, wdw.reshape(3, 3, 1, hdim), window_strides=(1, 1), padding="SAME",
        dimension_numbers=("NHWC", "HWIO", "NHWC"),
        feature_group_count=hdim) + bdw
    y = bn_relu(y, g3, be3)
    y = jnp.einsum("nhwc,cd->nhwd", y, w2) + b2
    if ins != outs:
        wsk, bsk = rest
        res = jnp.einsum("nhwc,cd->nhwd", x, wsk) + bsk
    else:
        res = x
    return jnp.transpose(y + res, (0, 3, 1, 2))


if __name__ == "__main__":
    ins, outs = 4, 8          # ins != outs -> skipConv path exercised; hdim = 4
    N, H, W = 2, 16, 16
    key = jax.random.PRNGKey(0)
    kx, kp = jax.random.split(key)
    x = jax.random.normal(kx, (N, ins, H, W), jnp.float32)   # NCHW like PyTorch
    params = init_params(kp, ins, outs)

    out = residual_forward(x, params, ins, outs)
    out = jax.block_until_ready(out)
    assert out.shape == (N, outs, H, W)

    ref = reference_forward(x, params, ins, outs)
    err = float(jnp.max(jnp.abs(out - ref)))
    assert jnp.allclose(out, ref, atol=1e-3, rtol=1e-3), f"max abs diff = {err}"

    # bf16 activation / intermediate storage path (v6e/v7x); BN stats and all
    # accumulation stay f32, so only storage rounding shows up -> loose check.
    out_bf16 = residual_forward(x, params, ins, outs, act_dtype=jnp.bfloat16)
    out_bf16 = jax.block_until_ready(out_bf16)
    err_bf16 = float(jnp.max(jnp.abs(out_bf16 - ref)))
    assert err_bf16 < 0.25, f"bf16 max abs diff = {err_bf16}"

    print("KERNEL_OK")
</pallas_src>

<mosaic_0001>
module attributes {stable_mosaic.version = 11 : i64} {
  func.func @_stats_kernel(%arg0: i32, %arg1: memref<8x256xf32, #tpu.memory_space<vmem>>, %arg2: memref<1x8x2xf32, #tpu.memory_space<vmem>>) attributes {dimension_semantics = [#tpu.dimension_semantics<parallel>], iteration_bounds = array<i64: 1>, scalar_prefetch = 0 : i64, scratch_operands = 0 : i64, tpu.core_type = #tpu.core_type<tc>, window_params = [{transform_indices = @transform_0, window_bounds = array<i64: 8, 256>}, {transform_indices = @transform_1, window_bounds = array<i64: 1, 8, 2>}]} {
    %c0 = arith.constant 0 : index
    %c0_0 = arith.constant 0 : index
    %0 = vector.load %arg1[%c0, %c0_0] : memref<8x256xf32, #tpu.memory_space<vmem>>, vector<8x256xf32>
    %cst = arith.constant dense<0.000000e+00> : vector<8xf32>
    %1 = vector.multi_reduction <add>, %0, %cst [1] : vector<8x256xf32> to vector<8xf32>
    %2 = vector.shape_cast %1 : vector<8xf32> to vector<8x1xf32>
    %3 = arith.mulf %0, %0 : vector<8x256xf32>
    %cst_1 = arith.constant dense<0.000000e+00> : vector<8xf32>
    %4 = vector.multi_reduction <add>, %3, %cst_1 [1] : vector<8x256xf32> to vector<8xf32>
    %5 = vector.shape_cast %4 : vector<8xf32> to vector<8x1xf32>
    %6 = tpu.concatenate %2, %5 in 1 : vector<8x1xf32>, vector<8x1xf32> -> vector<8x2xf32>
    %c0_2 = arith.constant 0 : index
    %c0_3 = arith.constant 0 : index
    %c0_4 = arith.constant 0 : index
    %7 = vector.load %arg2[%c0_2, %c0_3, %c0_4] : memref<1x8x2xf32, #tpu.memory_space<vmem>>, vector<1x8x2xf32>
    %8 = vector.shape_cast %7 : vector<1x8x2xf32> to vector<8x2xf32>
    %9 = vector.shape_cast %6 : vector<8x2xf32> to vector<1x8x2xf32>
    tpu.vector_store %arg2[%c0_2, %c0_3, %c0_4], %9 {strides = array<i32>} : memref<1x8x2xf32, #tpu.memory_space<vmem>>, vector<1x8x2xf32>,
    return
  }
  func.func @transform_0(%arg0: i32) -> (i32, i32) {
    %c0_i32 = arith.constant 0 : i32
    %c0_i32_0 = arith.constant 0 : i32
    return %c0_i32, %arg0 : i32, i32
  }
  func.func @transform_1(%arg0: i32) -> (i32, i32, i32) {
    %c0_i32 = arith.constant 0 : i32
    %c0_i32_0 = arith.constant 0 : i32
    %c0_i32_1 = arith.constant 0 : i32
    return %arg0, %c0_i32, %c0_i32_0 : i32, i32, i32
  }
}

</mosaic_0001>

<bundles_post_ra>
// kernel: tpu_custom_call.1
= control target key start
LH: loop header
LB: loop body
LE: loop exit
PB: predicated region body
PF: predicated region fallthrough
CT: control target
= control target key end

     0   :  { %6 = vsyncpa [#allocation3], 0  ;;  %s64_s6 = smov [#allocation2]   ;;  %s90_s0 = inlined_call_operand.hbm [shape: f32[8,256], index: 0, kind: input, shape index: {}]   ;;  %s91_s1 = inlined_call_operand.vmem [shape: f32[1,8,2], index: 1, kind: output, shape index: {}]  }
   0x1   :  { %s13_s7 = sshll.u32 %s64_s6, 4  ;;  %s40_s10 = scalar_lea.hbm %s90_s0, 256  ;;  %s14_s7 = int_to_ptr.vmem [resolvable:$true] %s13_s7 }
   0x2   :  { %p41_p0 = scmp.ne.s32.totalorder %s90_s0, %s40_s10  ;;  %p44_p1 = scmp.lt.u32.totalorder %s40_s10, %s90_s0 }
   0x4   :  { %p46_p2 = pnand %p44_p1, %p41_p0 }
   0x6   :  { %49 = shalt.err (!%p46_p2)
}
   0x7   :  { %s50_s15 = scalar_lea.vmem %s14_s7, 256  ;;  %p55_p4 = scmp.lt.s32.totalorder %s14_s7, %s14_s7 }
   0x8   :  { %p51_p3 = scmp.ne.s32.totalorder %s14_s7, %s50_s15  ;;  %p56_p5 = scmp.lt.s32.totalorder %s50_s15, %s50_s15 }
   0xa   :  { %p57_p6 = por %p56_p5, %p55_p4 }
   0xc   :  { %p58_p7 = pnand %p57_p6, %p51_p3 }
   0xe   :  { %61 = shalt.err (!%p58_p7)
}
   0xf   :  { %16 = dma.hbm_to_vmem [thread:$0]  %s90_s0, 256, %s14_s7, [#allocation3]  }
  0x10   :  { %62 = dma.done.wait [#allocation3], 256  }
  0x11   :  { %63 = vsyncadd [#allocation3], 4294967040  ;;  %v20_v0 = vld [vmem:[#allocation2] sm:$0xff]  ;;  %v21_v1 = vld [vmem:[#allocation2 + $0x8] sm:$0xff]  ;;  %vm30_vm0 = vcmask 7168   ;;  %vm32_vm1 = vcmask 15360  }
  0x12   :  { %v22_v2 = vadd.f32 %v21_v1, %v20_v0  ;;  %v25_v3 = vmul.f32 %v20_v0, %v20_v0  ;;  %v26_v4 = vmul.f32 %v21_v1, %v21_v1 }
  0x14   :  { %23 = vadd.xlane.f32.xlu0 %v22_v2  ;;  %v27_v5 = vadd.f32 %v26_v4, %v25_v3 }
  0x18   :  { %28 = vadd.xlane.f32.xlu0 %v27_v5 }
  0xa1   :  { %v24_v6 = vpop.xlane.xlu0 %23 }
  0xa5   :  { %v29_v7 = vpop.xlane.xlu0 %28 }
  0xa6   :  { %v31_v8 = vsel %vm30_vm0, %v24_v6, %v29_v7 }
  0xa7   :  { %33 = vst.msk [vmem:[%s91_s1] sm:$0xff] %vm32_vm1, %v31_v8 }
  0xa8   :  { %38 = vsyncpa [#allocation3], 1 }

</bundles_post_ra>
